<compile_context>
chip_gen: v7x
topology: tpu7x:2x2x1
jax: 0.10.0
libtpu: 0.0.40
codegen_flags: <defaults>
</compile_context>

<pallas_src>
import jax
import jax.numpy as jnp
import numpy as np
from jax import lax
from jax.experimental import pallas as pl
from jax.experimental.pallas import tpu as pltpu


def _round_up(x: int, m: int) -> int:
    return ((x + m - 1) // m) * m


def fashion_classifier_kernel(ids_ref, ew_ref, b_ref, out_ref, acc_ref):
    """One (batch-tile, vocab-tile) grid step.

    ids_ref : (TB, S)   int32  token ids for this batch tile
    ew_ref  : (TV, Cp)  f32    vocab tile of the folded table (E @ W^T) / S
    b_ref   : (1, Cp)   f32    bias (lane-padded)
    out_ref : (TB, Cp)  f32    logits (written on the last vocab tile)
    acc_ref : (TB, Cp)  f32    VMEM accumulator (persists across vocab tiles)
    """
    v_idx = pl.program_id(1)
    TB, S = ids_ref.shape
    TV = ew_ref.shape[0]

    @pl.when(v_idx == 0)
    def _():
        acc_ref[...] = jnp.zeros_like(acc_ref)

    ids = ids_ref[...]                                        # (TB, S) int32
    v_start = v_idx * TV
    vocab_iota = lax.broadcasted_iota(jnp.int32, (TB, TV), 1) + v_start

    # counts[b, v_local] = sum_s [ids[b, s] == v_start + v_local]
    # Static loop over S keeps the live footprint at (TB, TV); no 3-D one-hot.
    counts = jnp.zeros((TB, TV), jnp.float32)
    for s in range(S):
        counts = counts + (ids[:, s:s + 1] == vocab_iota).astype(jnp.float32)

    # Single MXU matmul per vocab tile; accumulate in f32.
    acc_ref[...] += jnp.dot(counts, ew_ref[...],
                            preferred_element_type=jnp.float32)

    @pl.when(v_idx == pl.num_programs(1) - 1)
    def _():
        out_ref[...] = (acc_ref[...] + b_ref[...]).astype(out_ref.dtype)


def fashion_classifier(text_ids, emb_table, fc_weight, fc_bias,
                       *, tv_max: int = 512, tb_max: int = 128):
    """text_ids: (B, S) int32; emb_table: (V, D); fc_weight: (C, D); fc_bias: (C,)."""
    B, S = text_ids.shape
    V, _D = emb_table.shape
    C = fc_weight.shape[0]

    # ---- padding / tiling choices ------------------------------------------
    C_pad = 128                                   # lane-dense output
    TB = min(tb_max, _round_up(B, 8))             # sublane-aligned batch tile
    B_pad = _round_up(B, TB)
    TV = min(tv_max, _round_up(V, 8))             # vocab tile (8-aligned)
    V_pad = _round_up(V, TV)

    # ---- fold fc + 1/S into the table (done once, outside the kernel) ------
    ew = (emb_table.astype(jnp.float32) @ fc_weight.astype(jnp.float32).T)
    ew = ew * (1.0 / np.float32(S))                               # (V, C)
    ew = jnp.pad(ew, ((0, V_pad - V), (0, C_pad - C)))            # (V_pad, 128)
    bias = jnp.pad(fc_bias.astype(jnp.float32), (0, C_pad - C)).reshape(1, C_pad)

    # pad batch rows with padding_idx=0 tokens; sliced off below.
    ids = jnp.pad(text_ids.astype(jnp.int32), ((0, B_pad - B), (0, 0)))

    grid = (B_pad // TB, V_pad // TV)             # (parallel batch, arbitrary vocab)

    cost = pl.CostEstimate(
        flops=2 * B_pad * V_pad * C_pad + B_pad * S * V_pad,
        transcendentals=0,
        bytes_accessed=ew.size * 4 + ids.size * 4 + bias.size * 4 + B_pad * C_pad * 4,
    )

    out = pl.pallas_call(
        fashion_classifier_kernel,
        out_shape=jax.ShapeDtypeStruct((B_pad, C_pad), jnp.float32),
        grid_spec=pltpu.PrefetchScalarGridSpec(
            num_scalar_prefetch=0,
            grid=grid,
            in_specs=[
                pl.BlockSpec((TB, S), lambda b, v: (b, 0)),       # ids
                pl.BlockSpec((TV, C_pad), lambda b, v: (v, 0)),   # folded table tile
                pl.BlockSpec((1, C_pad), lambda b, v: (0, 0)),    # bias
            ],
            out_specs=pl.BlockSpec((TB, C_pad), lambda b, v: (b, 0)),
            scratch_shapes=[pltpu.VMEM((TB, C_pad), jnp.float32)],
        ),
        compiler_params=pltpu.CompilerParams(
            dimension_semantics=("parallel", "arbitrary"),
            vmem_limit_bytes=48 * 1024 * 1024,    # stays under v7x's 64 MiB/TC
        ),
        cost_estimate=cost,
    )(ids, ew, bias)

    return out[:B, :C]


if __name__ == "__main__":
    # Small, deterministic problem consistent with the module's forward.
    vocab_size, embed_dim, num_class = 32, 32, 10
    batch, seq = 2, 8

    key = jax.random.PRNGKey(0)
    k_ids, k_emb, k_w, k_b = jax.random.split(key, 4)

    text = jax.random.randint(k_ids, (batch, seq), 0, vocab_size, dtype=jnp.int32)

    emb = jax.random.normal(k_emb, (vocab_size, embed_dim), dtype=jnp.float32) * 0.1
    emb = emb.at[0].set(0.0)                      # padding_idx=0 -> zero row
    fc_w = jax.random.normal(k_w, (num_class, embed_dim), dtype=jnp.float32) * 0.1
    fc_b = jax.random.normal(k_b, (num_class,), dtype=jnp.float32) * 0.1

    out = fashion_classifier(text, emb, fc_w, fc_b)
    out = jax.block_until_ready(out)

    # Pure-JAX reference (embedding gather -> mean over seq -> linear).
    ref = jnp.take(emb, text, axis=0).mean(axis=1) @ fc_w.T + fc_b
    np.testing.assert_allclose(np.asarray(out), np.asarray(ref), rtol=1e-5, atol=1e-5)

    print("KERNEL_OK")
</pallas_src>

<mosaic_0001>
module attributes {stable_mosaic.version = 11 : i64} {
  func.func @fashion_classifier_kernel(%arg0: i32, %arg1: i32, %arg2: memref<8x8xi32, #tpu.memory_space<vmem>>, %arg3: memref<32x128xf32, #tpu.memory_space<vmem>>, %arg4: memref<1x128xf32, #tpu.memory_space<vmem>>, %arg5: memref<8x128xf32, #tpu.memory_space<vmem>>, %arg6: memref<8x128xf32, #tpu.memory_space<vmem>>) attributes {dimension_semantics = [#tpu.dimension_semantics<parallel>, #tpu.dimension_semantics<arbitrary>], iteration_bounds = array<i64: 1, 1>, scalar_prefetch = 0 : i64, scratch_operands = 1 : i64, tpu.core_type = #tpu.core_type<tc>, window_params = [{transform_indices = @transform_0, window_bounds = array<i64: 8, 8>}, {transform_indices = @transform_1, window_bounds = array<i64: 32, 128>}, {pipeline_mode = #tpu.pipeline_mode<synchronous>, transform_indices = @transform_2, window_bounds = array<i64: 1, 128>}, {transform_indices = @transform_3, window_bounds = array<i64: 8, 128>}]} {
    %c0_i32 = arith.constant 0 : i32
    %0 = arith.cmpi eq, %arg1, %c0_i32 : i32
    %1 = arith.extui %0 : i1 to i32
    %c0_i32_0 = arith.constant 0 : i32
    %2 = arith.cmpi ne, %1, %c0_i32_0 : i32
    scf.if %2 {
      %cst_11 = arith.constant 0.000000e+00 : f32
      %65 = vector.broadcast %cst_11 : f32 to vector<8x128xf32>
      %c0_12 = arith.constant 0 : index
      %c0_13 = arith.constant 0 : index
      %66 = vector.load %arg6[%c0_12, %c0_13] : memref<8x128xf32, #tpu.memory_space<vmem>>, vector<8x128xf32>
      tpu.vector_store %arg6[%c0_12, %c0_13], %65 {strides = array<i32>} : memref<8x128xf32, #tpu.memory_space<vmem>>, vector<8x128xf32>,
    } else {
    }
    %c0 = arith.constant 0 : index
    %c0_1 = arith.constant 0 : index
    %3 = vector.load %arg2[%c0, %c0_1] : memref<8x8xi32, #tpu.memory_space<vmem>>, vector<8x8xi32>
    %c32_i32 = arith.constant 32 : i32
    %4 = arith.muli %arg1, %c32_i32 : i32
    %5 = tpu.iota {dimensions = array<i32: 1>} : vector<8x32xi32>
    %6 = vector.broadcast %4 : i32 to vector<8x32xi32>
    %7 = arith.addi %5, %6 : vector<8x32xi32>
    %cst = arith.constant 0.000000e+00 : f32
    %8 = vector.broadcast %cst : f32 to vector<8x32xf32>
    %9 = vector.extract_strided_slice %3 {offsets = [0, 0], sizes = [8, 1], strides = [1, 1]} : vector<8x8xi32> to vector<8x1xi32>
    %10 = vector.broadcast %9 : vector<8x1xi32> to vector<8x32xi32>
    %11 = arith.cmpi eq, %10, %7 : vector<8x32xi32>
    %12 = arith.extui %11 : vector<8x32xi1> to vector<8x32xi32>
    %13 = arith.sitofp %12 : vector<8x32xi32> to vector<8x32xf32>
    %14 = arith.addf %8, %13 : vector<8x32xf32>
    %15 = vector.extract_strided_slice %3 {offsets = [0, 1], sizes = [8, 1], strides = [1, 1]} : vector<8x8xi32> to vector<8x1xi32>
    %16 = vector.broadcast %15 : vector<8x1xi32> to vector<8x32xi32>
    %17 = arith.cmpi eq, %16, %7 : vector<8x32xi32>
    %18 = arith.extui %17 : vector<8x32xi1> to vector<8x32xi32>
    %19 = arith.sitofp %18 : vector<8x32xi32> to vector<8x32xf32>
    %20 = arith.addf %14, %19 : vector<8x32xf32>
    %21 = vector.extract_strided_slice %3 {offsets = [0, 2], sizes = [8, 1], strides = [1, 1]} : vector<8x8xi32> to vector<8x1xi32>
    %22 = vector.broadcast %21 : vector<8x1xi32> to vector<8x32xi32>
    %23 = arith.cmpi eq, %22, %7 : vector<8x32xi32>
    %24 = arith.extui %23 : vector<8x32xi1> to vector<8x32xi32>
    %25 = arith.sitofp %24 : vector<8x32xi32> to vector<8x32xf32>
    %26 = arith.addf %20, %25 : vector<8x32xf32>
    %27 = vector.extract_strided_slice %3 {offsets = [0, 3], sizes = [8, 1], strides = [1, 1]} : vector<8x8xi32> to vector<8x1xi32>
    %28 = vector.broadcast %27 : vector<8x1xi32> to vector<8x32xi32>
    %29 = arith.cmpi eq, %28, %7 : vector<8x32xi32>
    %30 = arith.extui %29 : vector<8x32xi1> to vector<8x32xi32>
    %31 = arith.sitofp %30 : vector<8x32xi32> to vector<8x32xf32>
    %32 = arith.addf %26, %31 : vector<8x32xf32>
    %33 = vector.extract_strided_slice %3 {offsets = [0, 4], sizes = [8, 1], strides = [1, 1]} : vector<8x8xi32> to vector<8x1xi32>
    %34 = vector.broadcast %33 : vector<8x1xi32> to vector<8x32xi32>
    %35 = arith.cmpi eq, %34, %7 : vector<8x32xi32>
    %36 = arith.extui %35 : vector<8x32xi1> to vector<8x32xi32>
    %37 = arith.sitofp %36 : vector<8x32xi32> to vector<8x32xf32>
    %38 = arith.addf %32, %37 : vector<8x32xf32>
    %39 = vector.extract_strided_slice %3 {offsets = [0, 5], sizes = [8, 1], strides = [1, 1]} : vector<8x8xi32> to vector<8x1xi32>
    %40 = vector.broadcast %39 : vector<8x1xi32> to vector<8x32xi32>
    %41 = arith.cmpi eq, %40, %7 : vector<8x32xi32>
    %42 = arith.extui %41 : vector<8x32xi1> to vector<8x32xi32>
    %43 = arith.sitofp %42 : vector<8x32xi32> to vector<8x32xf32>
    %44 = arith.addf %38, %43 : vector<8x32xf32>
    %45 = vector.extract_strided_slice %3 {offsets = [0, 6], sizes = [8, 1], strides = [1, 1]} : vector<8x8xi32> to vector<8x1xi32>
    %46 = vector.broadcast %45 : vector<8x1xi32> to vector<8x32xi32>
    %47 = arith.cmpi eq, %46, %7 : vector<8x32xi32>
    %48 = arith.extui %47 : vector<8x32xi1> to vector<8x32xi32>
    %49 = arith.sitofp %48 : vector<8x32xi32> to vector<8x32xf32>
    %50 = arith.addf %44, %49 : vector<8x32xf32>
    %51 = vector.extract_strided_slice %3 {offsets = [0, 7], sizes = [8, 1], strides = [1, 1]} : vector<8x8xi32> to vector<8x1xi32>
    %52 = vector.broadcast %51 : vector<8x1xi32> to vector<8x32xi32>
    %53 = arith.cmpi eq, %52, %7 : vector<8x32xi32>
    %54 = arith.extui %53 : vector<8x32xi1> to vector<8x32xi32>
    %55 = arith.sitofp %54 : vector<8x32xi32> to vector<8x32xf32>
    %56 = arith.addf %50, %55 : vector<8x32xf32>
    %c0_2 = arith.constant 0 : index
    %c0_3 = arith.constant 0 : index
    %57 = vector.load %arg6[%c0_2, %c0_3] : memref<8x128xf32, #tpu.memory_space<vmem>>, vector<8x128xf32>
    %c0_4 = arith.constant 0 : index
    %c0_5 = arith.constant 0 : index
    %58 = vector.load %arg3[%c0_4, %c0_5] : memref<32x128xf32, #tpu.memory_space<vmem>>, vector<32x128xf32>
    %cst_6 = arith.constant dense<0.000000e+00> : vector<8x128xf32>
    %59 = tpu.matmul %56, %58, %cst_6 {dimension_numbers = #tpu.dot_dimension_numbers<[1], [0], [0], [1], [0, 0, 1, 1], [], []>} : vector<8x32xf32>, vector<32x128xf32>, vector<8x128xf32> -> vector<8x128xf32>
    %60 = arith.addf %57, %59 : vector<8x128xf32>
    %c0_7 = arith.constant 0 : index
    %c0_8 = arith.constant 0 : index
    %61 = vector.load %arg6[%c0_7, %c0_8] : memref<8x128xf32, #tpu.memory_space<vmem>>, vector<8x128xf32>
    tpu.vector_store %arg6[%c0_7, %c0_8], %60 {strides = array<i32>} : memref<8x128xf32, #tpu.memory_space<vmem>>, vector<8x128xf32>,
    %c0_i32_9 = arith.constant 0 : i32
    %62 = arith.cmpi eq, %arg1, %c0_i32_9 : i32
    %63 = arith.extui %62 : i1 to i32
    %c0_i32_10 = arith.constant 0 : i32
    %64 = arith.cmpi ne, %63, %c0_i32_10 : i32
    scf.if %64 {
      %c0_11 = arith.constant 0 : index
      %c0_12 = arith.constant 0 : index
      %65 = vector.load %arg6[%c0_11, %c0_12] : memref<8x128xf32, #tpu.memory_space<vmem>>, vector<8x128xf32>
      %c0_13 = arith.constant 0 : index
      %c0_14 = arith.constant 0 : index
      %66 = vector.load %arg4[%c0_13, %c0_14] : memref<1x128xf32, #tpu.memory_space<vmem>>, vector<1x128xf32>
      %67 = vector.broadcast %66 : vector<1x128xf32> to vector<8x128xf32>
      %68 = arith.addf %65, %67 : vector<8x128xf32>
      %c0_15 = arith.constant 0 : index
      %c0_16 = arith.constant 0 : index
      %69 = vector.load %arg5[%c0_15, %c0_16] : memref<8x128xf32, #tpu.memory_space<vmem>>, vector<8x128xf32>
      tpu.vector_store %arg5[%c0_15, %c0_16], %68 {strides = array<i32>} : memref<8x128xf32, #tpu.memory_space<vmem>>, vector<8x128xf32>,
    } else {
    }
    return
  }
  func.func @transform_0(%arg0: i32, %arg1: i32) -> (i32, i32) {
    %c0_i32 = arith.constant 0 : i32
    %c0_i32_0 = arith.constant 0 : i32
    return %arg0, %c0_i32 : i32, i32
  }
  func.func @transform_1(%arg0: i32, %arg1: i32) -> (i32, i32) {
    %c0_i32 = arith.constant 0 : i32
    %c0_i32_0 = arith.constant 0 : i32
    return %arg1, %c0_i32 : i32, i32
  }
  func.func @transform_2(%arg0: i32, %arg1: i32) -> (i32, i32) {
    %c0_i32 = arith.constant 0 : i32
    %c0_i32_0 = arith.constant 0 : i32
    %c0_i32_1 = arith.constant 0 : i32
    return %c0_i32, %c0_i32_0 : i32, i32
  }
  func.func @transform_3(%arg0: i32, %arg1: i32) -> (i32, i32) {
    %c0_i32 = arith.constant 0 : i32
    %c0_i32_0 = arith.constant 0 : i32
    return %arg0, %c0_i32 : i32, i32
  }
}

</mosaic_0001>

<bundles_post_ra>
// kernel: tpu_custom_call.1
= control target key start
LH: loop header
LB: loop body
LE: loop exit
PB: predicated region body
PF: predicated region fallthrough
CT: control target
= control target key end

     0   :  { %8 = vsyncpa [#allocation4], 0  ;;  %s429_s0 = inlined_call_operand.hbm [shape: s32[8,8], index: 0, kind: input, shape index: {}]   ;;  %s430_s1 = inlined_call_operand.hbm [shape: f32[32,128], index: 1, kind: input, shape index: {}]   ;;  %s431_s2 = inlined_call_operand.vmem [shape: f32[1,128], index: 2, kind: input, shape index: {}]   ;;  %s432_s3 = inlined_call_operand.hbm [shape: f32[8,128], index: 3, kind: output, shape index: {}]  }
   0x1   :  { %9 = vsyncpa [#allocation7], 0 }
   0x2   :  { %10 = vsyncpa [#allocation5], 0  ;;  %s347_s12 = smov [#allocation3]   ;;  %s348_s14 = smov [#allocation6]  }
   0x3   :  { %s17_s13 = sshll.u32 %s347_s12, 4  ;;  %s26_s15 = sshll.u32 %s348_s14, 4  ;;  %s18_s13 = int_to_ptr.vmem [resolvable:$true] %s17_s13  ;;  %s383_s15 = int_to_ptr.vmem [resolvable:$true] %s26_s15 }
   0x4   :  { %s275_s18 = scalar_lea.hbm %s429_s0, 128 }
   0x5   :  { %p276_p0 = scmp.ne.s32.totalorder %s429_s0, %s275_s18  ;;  %p279_p1 = scmp.lt.u32.totalorder %s275_s18, %s429_s0 }
   0x7   :  { %p281_p2 = pnand %p279_p1, %p276_p0 }
   0x9   :  { %284 = shalt.err (!%p281_p2)
}
   0xa   :  { %s285_s23 = scalar_lea.vmem %s18_s13, 128  ;;  %p290_p4 = scmp.lt.s32.totalorder %s18_s13, %s18_s13 }
   0xb   :  { %p286_p3 = scmp.ne.s32.totalorder %s18_s13, %s285_s23  ;;  %p291_p5 = scmp.lt.s32.totalorder %s285_s23, %s285_s23 }
   0xd   :  { %p292_p6 = por %p291_p5, %p290_p4 }
   0xf   :  { %p293_p7 = pnand %p292_p6, %p286_p3 }
  0x11   :  { %296 = shalt.err (!%p293_p7)
}
  0x12   :  { %20 = dma.hbm_to_vmem [thread:$0]  %s429_s0, 128, %s18_s13, [#allocation4]  }
  0x13   :  { %s297_s28 = scalar_lea.hbm %s430_s1, 512 }
  0x14   :  { %p298_p8 = scmp.ne.s32.totalorder %s430_s1, %s297_s28  ;;  %p301_p9 = scmp.lt.u32.totalorder %s297_s28, %s430_s1 }
  0x16   :  { %p303_p10 = pnand %p301_p9, %p298_p8 }
  0x18   :  { %306 = shalt.err (!%p303_p10)
}
  0x19   :  { %s307_s6 = scalar_lea.vmem %s383_s15, 512  ;;  %p312_p12 = scmp.lt.s32.totalorder %s383_s15, %s383_s15 }
  0x1a   :  { %p308_p11 = scmp.ne.s32.totalorder %s383_s15, %s307_s6  ;;  %p313_p13 = scmp.lt.s32.totalorder %s307_s6, %s307_s6 }
  0x1c   :  { %p314_p0 = por %p313_p13, %p312_p12 }
  0x1e   :  { %p315_p1 = pnand %p314_p0, %p308_p11 }
  0x20   :  { %318 = shalt.err (!%p315_p1)
}
  0x21   :  { %s349_s0 = smov 128   ;;  %s350_s7 = smov 8  }
  0x22   :  { %32 = dma.hbm_to_vmem [thread:$0]  %s430_s1, 512, %s383_s15, [#allocation7], %s349_s0, %s349_s0, %s350_s7  }
  0x23   :  { %341 = dma.done.wait [#allocation4], 128  }
  0x24   :  { %342 = vsyncadd [#allocation4], 4294967168 }
  0x25   :  { %343 = dma.done.wait [#allocation7], 512  }
  0x26   :  { %344 = vsyncadd [#allocation7], 4294966784  ;;  %v351_v0 = vmov 2   ;;  %v352_v1 = vmov 0   ;;  %v46_v2 = vld [vmem:[#allocation3] sm:$0xff]  ;;  %v353_v3 = vmov 3   ;;  %v48_v17 = vlaneseq }
  0x27   :  { %268 = vset.pattern.permute.xlu1 %v351_v0  ;;  %266 = vset.pattern.permute.xlu0 %v352_v1  ;;  %v354_v4 = vmov 1   ;;  %v355_v5 = vmov 4   ;;  %v356_v6 = vmov 5   ;;  %v357_v7 = vmov 6   ;;  %v109_v8 = vld [vmem:[#allocation6] sm:$0xff]  ;;  %v110_v9 = vld [vmem:[#allocation6 + $0x8] sm:$0xff] }
  0x28   :  { %67 = vperm.xlu1 %268, %v46_v2   ;;  %53 = vperm.xlu0 %266, %v46_v2   ;;  %v358_v10 = vmov 7   ;;  %v245_v11 = vpack.c.bf16 %v110_v9, %v109_v8  ;;  %v359_v12 = vmov 0.0|0.0   ;;  %v111_v13 = vld [vmem:[#allocation6 + $0x10] sm:$0xff]  ;;  %v112_v14 = vld [vmem:[#allocation6 + $0x18] sm:$0xff]  ;;  %vm360_vm0 = vmmov 0   ;;  %s362_s11 = smov [#allocation8]  }
  0x29   :  { %244 = vmatprep.subr.bf16.mxu0 %v359_v12  ;;  %v248_v15 = vpack.c.bf16 %v112_v14, %v111_v13  ;;  %v361_v16 = vmov 0.0   ;;  %v49_v20 = vand.u32 127, %v48_v17  ;;  %vm113_vm9 = vcmask 261120   ;;  %v227_v42 = vld [vmem:[%s431_s2] ss:$0 sm:$0xff]  ;;  %s208_s12 = sshll.u32 %s362_s11, 4  ;;  %s209_s12 = int_to_ptr.vmem [resolvable:$true] %s208_s12 }
  0x2a   :  { %246 = vmatpush3.bf16.msra.mxu0 %v245_v11  ;;  %241 = vmatprep.mubr.msk.f32.mxu0 %vm360_vm0, %v361_v16  ;;  %s319_s13 = scalar_lea.vmem %s209_s12, 128  ;;  %p324_p3 = scmp.lt.s32.totalorder %s209_s12, %s209_s12 }
  0x2b   :  { %247 = vmatprep.subr.bf16.mxu0 %v359_v12  ;;  %p320_p2 = scmp.ne.s32.totalorder %s209_s12, %s319_s13  ;;  %p325_p4 = scmp.lt.s32.totalorder %s319_s13, %s319_s13 }
  0x2c   :  { %269 = vset.pattern.permute.xlu1 %v353_v3  ;;  %267 = vset.pattern.permute.xlu0 %v354_v4 }
  0x2d   :  { %74 = vperm.xlu1 %269, %v46_v2   ;;  %60 = vperm.xlu0 %267, %v46_v2   ;;  %p326_p5 = por %p325_p4, %p324_p3 }
  0x2e   :  { %249 = vmatpush3.bf16.msra.mxu0 %v248_v15 }
  0x2f   :  { %p327_p6 = pnand %p326_p5, %p320_p2 }
  0x31   :  { %270 = vset.pattern.permute.xlu1 %v355_v5  ;;  %271 = vset.pattern.permute.xlu0 %v356_v6 }
  0x32   :  { %81 = vperm.xlu1 %270, %v46_v2   ;;  %88 = vperm.xlu0 %271, %v46_v2  }
  0x36   :  { %272 = vset.pattern.permute.xlu1 %v357_v7  ;;  %274 = vset.pattern.permute.xlu0 %v358_v10 }
  0x37   :  { %95 = vperm.xlu1 %272, %v46_v2  }
  0x3b   :  { %273 = vset.pattern.permute.xlu1 %v358_v10 }
  0x3c   :  { %102 = vperm.xlu1 %273, %v46_v2  }
  0xa7   :  { %v68_v18 = vpop.permute.xlu1 %67  ;;  %v54_v19 = vpop.permute.xlu0 %53 }
  0xa8   :  { %vm55_vm1 = vcmp.eq.s32.totalorder %v54_v19, %v49_v20  ;;  %vm69_vm2 = vcmp.eq.s32.totalorder %v68_v18, %v49_v20 }
  0xa9   :  { %v218_v23 = vsel %vm55_vm1, 1.0, %v361_v16  ;;  %v220_v26 = vsel %vm69_vm2, 1.0, %v361_v16 }
  0xac   :  { %v75_v21 = vpop.permute.xlu1 %74  ;;  %v61_v22 = vpop.permute.xlu0 %60 }
  0xad   :  { %vm62_vm3 = vcmp.eq.s32.totalorder %v61_v22, %v49_v20  ;;  %vm76_vm4 = vcmp.eq.s32.totalorder %v75_v21, %v49_v20 }
  0xae   :  { %v219_v24 = vsel %vm62_vm3, 1.0, %v361_v16  ;;  %v221_v30 = vsel %vm76_vm4, 1.0, %v361_v16 }
  0xaf   :  { %v65_v25 = vadd.f32 %v219_v24, %v218_v23 }
  0xb1   :  { %v72_v27 = vadd.f32 %v220_v26, %v65_v25  ;;  %v82_v28 = vpop.permute.xlu1 %81  ;;  %v89_v29 = vpop.permute.xlu0 %88 }
  0xb2   :  { %vm83_vm5 = vcmp.eq.s32.totalorder %v82_v28, %v49_v20  ;;  %vm90_vm6 = vcmp.eq.s32.totalorder %v89_v29, %v49_v20 }
  0xb3   :  { %v79_v31 = vadd.f32 %v221_v30, %v72_v27  ;;  %v222_v32 = vsel %vm83_vm5, 1.0, %v361_v16  ;;  %v223_v34 = vsel %vm90_vm6, 1.0, %v361_v16 }
  0xb5   :  { %v86_v33 = vadd.f32 %v222_v32, %v79_v31 }
  0xb6   :  { %v96_v35 = vpop.permute.xlu1 %95 }
  0xb7   :  { %vm97_vm7 = vcmp.eq.s32.totalorder %v96_v35, %v49_v20  ;;  %v93_v36 = vadd.f32 %v223_v34, %v86_v33 }
  0xb8   :  { %v224_v37 = vsel %vm97_vm7, 1.0, %v361_v16 }
  0xb9   :  { %v100_v39 = vadd.f32 %v224_v37, %v93_v36 }
  0xbb   :  { %v103_v38 = vpop.permute.xlu1 %102 }
  0xbc   :  { %vm104_vm8 = vcmp.eq.s32.totalorder %v103_v38, %v49_v20 }
  0xbd   :  { %v225_v40 = vsel %vm104_vm8, 1.0, %v361_v16 }
  0xbe   :  { %v107_v41 = vadd.f32 %v225_v40, %v100_v39 }
  0xc0   :  { %242 = vmatmul.mubr.msk.f32.vlgmr.msra.gmra.mrb[0].mxu0 %vm113_vm9, %v107_v41 }
 0x193   :  { %v183_v43 = vpop.f32.mrb[0].mxu0 }
 0x194   :  { %v200_v44 = vadd.f32 %v227_v42, %v183_v43  ;;  %v243_v45 = vpop.f32.mrb[1].mxu0 }
 0x196   :  { %201 = vst [vmem:[#allocation8] sm:$0xff] %v200_v44 }
 0x197   :  { %330 = shalt.err (!%p327_p6)
}
 0x198   :  { %s331_s16 = scalar_lea.hbm %s432_s3, 128 }
 0x199   :  { %p332_p7 = scmp.ne.s32.totalorder %s432_s3, %s331_s16  ;;  %p335_p8 = scmp.lt.u32.totalorder %s331_s16, %s432_s3 }
 0x19b   :  { %p337_p9 = pnand %p335_p8, %p332_p7 }
 0x19d   :  { %340 = shalt.err (!%p337_p9)
}
 0x19e   :  { %211 = dma.vmem_to_hbm [thread:$0]  %s209_s12, 128, %s432_s3, [#allocation5]  }
 0x19f   :  { %345 = dma.done.wait [#allocation5], 128  }
 0x1a0   :  { %346 = vsyncadd [#allocation5], 4294967168 }
 0x1a1   :  { %215 = vsyncpa [#allocation4], 1 }
 0x1a2   :  { %216 = vsyncpa [#allocation7], 1 }
 0x1a3   :  { %217 = vsyncpa [#allocation5], 1 }

</bundles_post_ra>
